<compile_context>
chip_gen: v6e
topology: v6e:2x2x1
jax: 0.10.0
libtpu: 0.0.40
codegen_flags: <defaults>
</compile_context>

<pallas_src>
import functools
import re

import jax
import jax.numpy as jnp
from jax import lax
from jax.experimental import pallas as pl
from jax.experimental.pallas import tpu as pltpu

TEMPERATURE = 0.07
BASE_TEMPERATURE = 0.07


def _round_up(x, m):
    return ((x + m - 1) // m) * m


def _tpu_generation():
    try:
        kind = jax.devices()[0].device_kind
    except Exception:
        return 6
    m = re.search(r"v(\d+)", kind.lower())
    return int(m.group(1)) if m else 6


def _chip_params():
    gen = _tpu_generation()
    if gen >= 7:
        # 64 MiB physical VMEM per TC, 2 TCs -> tighter cap, split anchor tiles.
        return dict(ta_max=256, chunk_budget=12 << 20, chunk_cap=2048,
                    vmem_cap=30 << 20, bf16_exp=True, two_core=True)
    if gen == 6:
        return dict(ta_max=256, chunk_budget=16 << 20, chunk_cap=4096,
                    vmem_cap=64 << 20, bf16_exp=True, two_core=False)
    # v5e and older: 128-wide MXU, no bf16 VPU/EUP.
    return dict(ta_max=128, chunk_budget=16 << 20, chunk_cap=4096,
                vmem_cap=64 << 20, bf16_exp=False, two_core=False)


def _pick_chunk(n_rows, per_col_bytes, budget, cap):
    tc = (budget // max(per_col_bytes, 1)) // 128 * 128
    tc = int(max(128, min(tc, cap)))
    tc = min(tc, max(128, _round_up(max(n_rows, 1), 128)))
    return int(tc)


# ---------------------------------------------------------------------------
# Kernels
# ---------------------------------------------------------------------------
def _supcon_mask_kernel(anchor_ref, feat_ref, mask_ref, out_ref,
                        m_ref, d_ref, sp_ref, ps_ref, *,
                        batch_size, n_valid, chunk, ta,
                        temperature, base_temperature, bf16_exp):
    a = pl.program_id(0)          # anchor tile   (parallel)
    c = pl.program_id(1)          # contrast chunk (arbitrary / streamed reduction)
    inv_t = 1.0 / temperature

    @pl.when(c == 0)
    def _init():
        m_ref[...] = jnp.full(m_ref.shape, -jnp.inf, jnp.float32)
        d_ref[...] = jnp.zeros(d_ref.shape, jnp.float32)
        sp_ref[...] = jnp.zeros(sp_ref.shape, jnp.float32)
        ps_ref[...] = jnp.zeros(ps_ref.shape, jnp.float32)

    # [ta, chunk] logits: bf16 MXU with f32 accumulation, contracting the last
    # (D) dims of BOTH operands -> no in-kernel transpose.
    adc = lax.dot_general(anchor_ref[...], feat_ref[...],
                          (((1,), (1,)), ((), ())),
                          preferred_element_type=jnp.float32) * inv_t

    row_g = lax.broadcasted_iota(jnp.int32, (ta, chunk), 0) + a * ta
    col_g = lax.broadcasted_iota(jnp.int32, (ta, chunk), 1) + c * chunk
    # Fold the validity + self-contrast (diag) mask into the logits ONCE and
    # reuse it for both the running max and the exp sum.
    adc_m = jnp.where((col_g < n_valid) & (col_g != row_g), adc, -jnp.inf)

    m_prev = m_ref[...]
    m_new = jnp.maximum(m_prev, jnp.max(adc_m, axis=1, keepdims=True))
    shifted = adc_m - m_new
    if bf16_exp:   # v6e/v7x: bf16 EUP ~2x exp throughput; accumulators stay f32
        e = jnp.exp(shifted.astype(jnp.bfloat16)).astype(jnp.float32)
    else:
        e = jnp.exp(shifted)
    d_ref[...] = d_ref[...] * jnp.exp(m_prev - m_new) + jnp.sum(e, axis=1,
                                                                keepdims=True)

    # Positive mask streamed as int8 with the diagonal already folded in on the
    # host; padded columns are zero, so no extra where/multiply is needed.
    pos = mask_ref[...].astype(jnp.float32)
    sp_ref[...] = sp_ref[...] + jnp.sum(pos * adc, axis=1, keepdims=True)
    ps_ref[...] = ps_ref[...] + jnp.sum(pos, axis=1, keepdims=True)
    m_ref[...] = m_new

    @pl.when(c == pl.num_programs(1) - 1)
    def _finalize():
        log_denom = m_ref[...] + jnp.log(d_ref[...] + 1e-12)
        ps = ps_ref[...]
        # Exact reciprocal (runs once per anchor tile -> essentially free).
        mean_log_prob_pos = sp_ref[...] / jnp.maximum(ps, 1e-12) - log_denom
        row_ok = (lax.broadcasted_iota(jnp.int32, (ta, 1), 0) + a * ta) < batch_size
        # TODO(synk): anchors with zero positives produce NaN in the PyTorch
        # reference; here they are excluded from the sum instead (documented
        # divergence so callers are not silently surprised).
        keep = jnp.where(row_ok & (ps > 0.0), 1.0, 0.0)
        loss_rows = -(temperature / base_temperature) * mean_log_prob_pos * keep
        out_ref[0, 0] = jnp.sum(loss_rows)


def _supcon_queue_kernel(q_ref, k_ref, queue_ref, out_ref,
                         m_ref, d_ref, lp_ref, *,
                         batch_size, q_valid, chunk, ta, temperature, bf16_exp):
    a = pl.program_id(0)          # anchor tile (parallel)
    c = pl.program_id(1)          # queue chunk (arbitrary / streamed reduction)
    inv_t = 1.0 / temperature

    @pl.when(c == 0)
    def _init():
        qv = q_ref[...].astype(jnp.float32)
        kv = k_ref[...].astype(jnp.float32)
        l_pos = jnp.sum(qv * kv, axis=1, keepdims=True) * inv_t   # [ta, 1]
        lp_ref[...] = l_pos
        m_ref[...] = l_pos                                        # l_pos seeds the
        d_ref[...] = jnp.ones(d_ref.shape, jnp.float32)           # logsumexp state

    l_neg = lax.dot_general(q_ref[...], queue_ref[...],
                            (((1,), (1,)), ((), ())),
                            preferred_element_type=jnp.float32) * inv_t
    col_g = lax.broadcasted_iota(jnp.int32, (ta, chunk), 1) + c * chunk
    l_neg_m = jnp.where(col_g < q_valid, l_neg, -jnp.inf)

    m_prev = m_ref[...]
    m_new = jnp.maximum(m_prev, jnp.max(l_neg_m, axis=1, keepdims=True))
    shifted = l_neg_m - m_new
    if bf16_exp:
        e = jnp.exp(shifted.astype(jnp.bfloat16)).astype(jnp.float32)
    else:
        e = jnp.exp(shifted)
    d_ref[...] = d_ref[...] * jnp.exp(m_prev - m_new) + jnp.sum(e, axis=1,
                                                                keepdims=True)
    m_ref[...] = m_new

    @pl.when(c == pl.num_programs(1) - 1)
    def _finalize():
        lse = m_ref[...] + jnp.log(d_ref[...])
        per_example = lse - lp_ref[...]                           # CE with label 0
        row_ok = (lax.broadcasted_iota(jnp.int32, (ta, 1), 0) + a * ta) < batch_size
        out_ref[0, 0] = jnp.sum(per_example * jnp.where(row_ok, 1.0, 0.0))


# ---------------------------------------------------------------------------
# Host-side wrapper
# ---------------------------------------------------------------------------
def supcon_loss(features, mask=None, batch_size=-1,
                temperature=TEMPERATURE, base_temperature=BASE_TEMPERATURE):
    """Pallas implementation of SupConLoss.forward (mask and queue branches)."""
    n, d = features.shape
    b = int(batch_size)
    chip = _chip_params()

    feat_dt = jnp.bfloat16                  # MXU-native; f32 accumulation in-kernel
    fbytes = 2
    d_pad = _round_up(d, 128)               # lane-dense last dim

    # Anchor tiling (rows), sublane-aligned; sized per MXU generation.
    b_pad = _round_up(max(b, 1), 8)
    ta = min(b_pad, chip["ta_max"])
    b_pad = _round_up(b_pad, ta)
    a_tiles = b_pad // ta
    if chip["two_core"] and a_tiles == 1 and b_pad >= 64:
        # v7x megacore: make sure the "parallel" axis has >= 2 slices so the
        # second TensorCore gets work (ta kept a multiple of 32 for int8 tiles).
        ta = _round_up((b_pad + 1) // 2, 32)
        b_pad = _round_up(b_pad, ta)
        a_tiles = b_pad // ta

    def _prep(x, rows, cols, dtype):
        # Cast + pad fuse into one pass; pads are skipped when already aligned.
        if x.dtype != dtype:
            x = x.astype(dtype)
        rp, cp = rows - x.shape[0], cols - x.shape[1]
        if rp or cp:
            x = jnp.pad(x, ((0, rp), (0, cp)))
        return x

    if mask is not None:
        # per streamed column: double-buffered bf16 feature row + int8 mask col
        # + ~6 f32 [ta, chunk] compiler temporaries (logits/exp/iota masks).
        per_col = 2 * (d_pad * fbytes + ta) + 6 * ta * 4
        chunk = _pick_chunk(n, per_col, chip["chunk_budget"], chip["chunk_cap"])
        n_pad = _round_up(n, chunk)

        anchor_p = _prep(features[:b], b_pad, d_pad, feat_dt)
        feats_p = _prep(features, n_pad, d_pad, feat_dt)
        # Fold logits_mask (self-contrast exclusion) into the positive mask on
        # the host and stream it as int8 ({0,1} masks assumed, as in the paper).
        diag = jnp.arange(b)[:, None] == jnp.arange(n)[None, :]
        mask_i8 = jnp.where(diag, 0.0, mask.astype(jnp.float32)).astype(jnp.int8)
        mask_p = _prep(mask_i8, b_pad, n_pad, jnp.int8)

        grid = (a_tiles, n_pad // chunk)
        kernel = functools.partial(
            _supcon_mask_kernel, batch_size=b, n_valid=n, chunk=chunk, ta=ta,
            temperature=float(temperature),
            base_temperature=float(base_temperature),
            bf16_exp=chip["bf16_exp"])
        in_specs = [
            pl.BlockSpec((ta, d_pad), lambda a, c: (a, 0)),      # anchors (resident)
            pl.BlockSpec((chunk, d_pad), lambda a, c: (c, 0)),   # streamed contrast
            pl.BlockSpec((ta, chunk), lambda a, c: (a, c)),      # streamed int8 mask
        ]
        inputs = (anchor_p, feats_p, mask_p)
        n_scratch = 4
        stream_bytes = chunk * (d_pad * fbytes + ta)
        resident_bytes = ta * d_pad * fbytes
        flops = 2 * b_pad * n_pad * d_pad
        transc = b_pad * n_pad
        bytes_accessed = (a_tiles * n_pad * d_pad * fbytes
                          + b_pad * n_pad + b_pad * d_pad * fbytes)
    else:
        q_rows = n - 2 * b
        # Queue branch streams no mask -> don't charge mask bytes (bigger chunks).
        per_col = 2 * d_pad * fbytes + 6 * ta * 4
        chunk = _pick_chunk(q_rows, per_col, chip["chunk_budget"], chip["chunk_cap"])
        q_pad = max(chunk, _round_up(max(q_rows, 1), chunk))

        q_p = _prep(features[:b], b_pad, d_pad, feat_dt)
        k_p = _prep(features[b:2 * b], b_pad, d_pad, feat_dt)
        queue_p = _prep(features[2 * b:], q_pad, d_pad, feat_dt)

        grid = (a_tiles, q_pad // chunk)
        kernel = functools.partial(
            _supcon_queue_kernel, batch_size=b, q_valid=q_rows, chunk=chunk,
            ta=ta, temperature=float(temperature), bf16_exp=chip["bf16_exp"])
        in_specs = [
            pl.BlockSpec((ta, d_pad), lambda a, c: (a, 0)),      # q (resident)
            pl.BlockSpec((ta, d_pad), lambda a, c: (a, 0)),      # k (resident)
            pl.BlockSpec((chunk, d_pad), lambda a, c: (c, 0)),   # streamed queue
        ]
        inputs = (q_p, k_p, queue_p)
        n_scratch = 3
        stream_bytes = chunk * d_pad * fbytes
        resident_bytes = 2 * ta * d_pad * fbytes
        flops = 2 * b_pad * q_pad * d_pad + 2 * b_pad * d_pad
        transc = b_pad * q_pad
        bytes_accessed = a_tiles * q_pad * d_pad * fbytes + 2 * b_pad * d_pad * fbytes

    # Scoped VMEM: double-buffered streamed chunk + resident anchors + the large
    # [ta, chunk] f32 compiler temporaries + headroom; capped per generation.
    temp_bytes = 6 * ta * chunk * 4
    vmem_need = 2 * stream_bytes + resident_bytes + temp_bytes + (1 << 20)
    vmem_limit = int(min(max(int(vmem_need * 1.3), 16 << 20), chip["vmem_cap"]))

    out = pl.pallas_call(
        kernel,
        out_shape=jax.ShapeDtypeStruct((a_tiles, 1), jnp.float32),
        grid_spec=pltpu.PrefetchScalarGridSpec(
            num_scalar_prefetch=0,
            grid=grid,
            in_specs=in_specs,
            out_specs=pl.BlockSpec((1, 1), lambda a, c: (a, 0),
                                   memory_space=pltpu.MemorySpace.SMEM),
            scratch_shapes=[pltpu.VMEM((ta, 1), jnp.float32)] * n_scratch),
        compiler_params=pltpu.CompilerParams(
            dimension_semantics=("parallel", "arbitrary"),
            vmem_limit_bytes=vmem_limit),
        cost_estimate=pl.CostEstimate(flops=int(flops),
                                      transcendentals=int(transc),
                                      bytes_accessed=int(bytes_accessed)),
    )(*inputs)

    return jnp.sum(out) / b


# ---------------------------------------------------------------------------
# Pure-JAX references (mirror the PyTorch forward)
# ---------------------------------------------------------------------------
def _ref_mask_branch(features, mask, b, t=TEMPERATURE, bt=BASE_TEMPERATURE):
    adc = (features[:b] @ features.T) / t
    logits = adc - jnp.max(adc, axis=1, keepdims=True)
    logits_mask = jnp.ones_like(mask).at[jnp.arange(b), jnp.arange(b)].set(0.0)
    m = mask * logits_mask
    exp_logits = jnp.exp(logits) * logits_mask
    log_prob = logits - jnp.log(exp_logits.sum(1, keepdims=True) + 1e-12)
    mlpp = (m * log_prob).sum(1) / m.sum(1)
    return jnp.mean(-(t / bt) * mlpp)


def _ref_queue_branch(features, b, t=TEMPERATURE):
    q, k, queue = features[:b], features[b:2 * b], features[2 * b:]
    l_pos = jnp.sum(q * k, axis=1, keepdims=True)
    l_neg = q @ queue.T
    logits = jnp.concatenate([l_pos, l_neg], axis=1) / t
    lse = jax.nn.logsumexp(logits, axis=1)
    return jnp.mean(lse - logits[:, 0])


# ---------------------------------------------------------------------------
if __name__ == "__main__":
    key = jax.random.PRNGKey(0)
    B = 2          # batch_size (number of anchors)
    N = 8          # total number of feature rows
    D = 32         # hidden dim

    features = jax.random.normal(key, (N, D), dtype=jnp.float32)
    features = features / jnp.linalg.norm(features, axis=1, keepdims=True)

    # deterministic labels s.t. every anchor has at least one positive
    labels = jnp.array([0, 1, 0, 1, 0, 1, 2, 2], dtype=jnp.int32)
    mask = (labels[:B, None] == labels[None, :]).astype(jnp.float32)   # [B, N]

    # Tolerances account for bf16 features / bf16 exp vs the f32 reference.
    # --- mask (supervised) branch ---
    loss_mask = supcon_loss(features, mask=mask, batch_size=B)
    jax.block_until_ready(loss_mask)
    ref_mask = _ref_mask_branch(features, mask, B)
    assert jnp.allclose(loss_mask, ref_mask, rtol=5e-2, atol=5e-2), (loss_mask, ref_mask)

    # --- queue (MoCo) branch ---
    loss_queue = supcon_loss(features, mask=None, batch_size=B)
    jax.block_until_ready(loss_queue)
    ref_queue = _ref_queue_branch(features, B)
    assert jnp.allclose(loss_queue, ref_queue, rtol=5e-2, atol=5e-2), (loss_queue, ref_queue)

    print("KERNEL_OK")
</pallas_src>

<mosaic_0001>
module attributes {stable_mosaic.version = 11 : i64} {
  func.func @_supcon_mask_kernel(%arg0: i32, %arg1: i32, %arg2: memref<8x128xbf16, #tpu.memory_space<vmem>>, %arg3: memref<128x128xbf16, #tpu.memory_space<vmem>>, %arg4: memref<8x128xi8, #tpu.memory_space<vmem>>, %arg5: memref<1x1xf32, #tpu.memory_space<smem>>, %arg6: memref<8x1xf32, #tpu.memory_space<vmem>>, %arg7: memref<8x1xf32, #tpu.memory_space<vmem>>, %arg8: memref<8x1xf32, #tpu.memory_space<vmem>>, %arg9: memref<8x1xf32, #tpu.memory_space<vmem>>) attributes {dimension_semantics = [#tpu.dimension_semantics<parallel>, #tpu.dimension_semantics<arbitrary>], iteration_bounds = array<i64: 1, 1>, scalar_prefetch = 0 : i64, scratch_operands = 4 : i64, tpu.core_type = #tpu.core_type<tc>, window_params = [{transform_indices = @transform_0, window_bounds = array<i64: 8, 128>}, {transform_indices = @transform_1, window_bounds = array<i64: 128, 128>}, {transform_indices = @transform_2, window_bounds = array<i64: 8, 128>}, {transform_indices = @transform_3, window_bounds = array<i64: 1, 1>}]} {
    %c0_i32 = arith.constant 0 : i32
    %0 = arith.cmpi eq, %arg1, %c0_i32 : i32
    %1 = arith.extui %0 : i1 to i32
    %c0_i32_0 = arith.constant 0 : i32
    %2 = arith.cmpi ne, %1, %c0_i32_0 : i32
    scf.if %2 {
      %cst_31 = arith.constant 0xFF800000 : f32
      %56 = vector.broadcast %cst_31 : f32 to vector<8x1xf32>
      %c0_32 = arith.constant 0 : index
      %c0_33 = arith.constant 0 : index
      %57 = vector.load %arg6[%c0_32, %c0_33] : memref<8x1xf32, #tpu.memory_space<vmem>>, vector<8x1xf32>
      tpu.vector_store %arg6[%c0_32, %c0_33], %56 {strides = array<i32>} : memref<8x1xf32, #tpu.memory_space<vmem>>, vector<8x1xf32>,
      %cst_34 = arith.constant 0.000000e+00 : f32
      %58 = vector.broadcast %cst_34 : f32 to vector<8x1xf32>
      %c0_35 = arith.constant 0 : index
      %c0_36 = arith.constant 0 : index
      %59 = vector.load %arg7[%c0_35, %c0_36] : memref<8x1xf32, #tpu.memory_space<vmem>>, vector<8x1xf32>
      tpu.vector_store %arg7[%c0_35, %c0_36], %58 {strides = array<i32>} : memref<8x1xf32, #tpu.memory_space<vmem>>, vector<8x1xf32>,
      %cst_37 = arith.constant 0.000000e+00 : f32
      %60 = vector.broadcast %cst_37 : f32 to vector<8x1xf32>
      %c0_38 = arith.constant 0 : index
      %c0_39 = arith.constant 0 : index
      %61 = vector.load %arg8[%c0_38, %c0_39] : memref<8x1xf32, #tpu.memory_space<vmem>>, vector<8x1xf32>
      tpu.vector_store %arg8[%c0_38, %c0_39], %60 {strides = array<i32>} : memref<8x1xf32, #tpu.memory_space<vmem>>, vector<8x1xf32>,
      %cst_40 = arith.constant 0.000000e+00 : f32
      %62 = vector.broadcast %cst_40 : f32 to vector<8x1xf32>
      %c0_41 = arith.constant 0 : index
      %c0_42 = arith.constant 0 : index
      %63 = vector.load %arg9[%c0_41, %c0_42] : memref<8x1xf32, #tpu.memory_space<vmem>>, vector<8x1xf32>
      tpu.vector_store %arg9[%c0_41, %c0_42], %62 {strides = array<i32>} : memref<8x1xf32, #tpu.memory_space<vmem>>, vector<8x1xf32>,
    } else {
    }
    %c0 = arith.constant 0 : index
    %c0_1 = arith.constant 0 : index
    %3 = vector.load %arg2[%c0, %c0_1] : memref<8x128xbf16, #tpu.memory_space<vmem>>, vector<8x128xbf16>
    %c0_2 = arith.constant 0 : index
    %c0_3 = arith.constant 0 : index
    %4 = vector.load %arg3[%c0_2, %c0_3] : memref<128x128xbf16, #tpu.memory_space<vmem>>, vector<128x128xbf16>
    %cst = arith.constant dense<0.000000e+00> : vector<8x128xf32>
    %5 = tpu.matmul %3, %4, %cst {dimension_numbers = #tpu.dot_dimension_numbers<[1], [1], [0], [0], [0, 0, 1, 0], [], []>} : vector<8x128xbf16>, vector<128x128xbf16>, vector<8x128xf32> -> vector<8x128xf32>
    %cst_4 = arith.constant 14.2857141 : f32
    %6 = vector.broadcast %cst_4 : f32 to vector<8x128xf32>
    %7 = arith.mulf %5, %6 : vector<8x128xf32>
    %8 = tpu.iota {dimensions = array<i32: 0>} : vector<8x128xi32>
    %c8_i32 = arith.constant 8 : i32
    %9 = arith.muli %arg0, %c8_i32 : i32
    %10 = vector.broadcast %9 : i32 to vector<8x128xi32>
    %11 = arith.addi %8, %10 : vector<8x128xi32>
    %12 = tpu.iota {dimensions = array<i32: 1>} : vector<8x128xi32>
    %c128_i32 = arith.constant 128 : i32
    %13 = arith.muli %arg1, %c128_i32 : i32
    %14 = vector.broadcast %13 : i32 to vector<8x128xi32>
    %15 = arith.addi %12, %14 : vector<8x128xi32>
    %c8_i32_5 = arith.constant 8 : i32
    %16 = vector.broadcast %c8_i32_5 : i32 to vector<8x128xi32>
    %17 = arith.cmpi slt, %15, %16 : vector<8x128xi32>
    %18 = arith.cmpi ne, %15, %11 : vector<8x128xi32>
    %19 = arith.andi %17, %18 : vector<8x128xi1>
    %cst_6 = arith.constant 0xFF800000 : f32
    %20 = vector.broadcast %cst_6 : f32 to vector<8x128xf32>
    %21 = arith.select %19, %7, %20 : vector<8x128xi1>, vector<8x128xf32>
    %c0_7 = arith.constant 0 : index
    %c0_8 = arith.constant 0 : index
    %22 = vector.load %arg6[%c0_7, %c0_8] : memref<8x1xf32, #tpu.memory_space<vmem>>, vector<8x1xf32>
    %cst_9 = arith.constant dense<0xFF800000> : vector<8xf32>
    %23 = vector.multi_reduction <maximumf>, %21, %cst_9 [1] : vector<8x128xf32> to vector<8xf32>
    %24 = vector.shape_cast %23 : vector<8xf32> to vector<8x1xf32>
    %25 = arith.maximumf %22, %24 : vector<8x1xf32>
    %26 = vector.broadcast %25 : vector<8x1xf32> to vector<8x128xf32>
    %27 = arith.subf %21, %26 : vector<8x128xf32>
    %28 = arith.truncf %27 : vector<8x128xf32> to vector<8x128xbf16>
    %29 = math.exp %28 : vector<8x128xbf16>
    %30 = arith.extf %29 : vector<8x128xbf16> to vector<8x128xf32>
    %c0_10 = arith.constant 0 : index
    %c0_11 = arith.constant 0 : index
    %31 = vector.load %arg7[%c0_10, %c0_11] : memref<8x1xf32, #tpu.memory_space<vmem>>, vector<8x1xf32>
    %32 = arith.subf %22, %25 : vector<8x1xf32>
    %33 = math.exp %32 : vector<8x1xf32>
    %34 = arith.mulf %31, %33 : vector<8x1xf32>
    %cst_12 = arith.constant dense<0.000000e+00> : vector<8xf32>
    %35 = vector.multi_reduction <add>, %30, %cst_12 [1] : vector<8x128xf32> to vector<8xf32>
    %36 = vector.shape_cast %35 : vector<8xf32> to vector<8x1xf32>
    %37 = arith.addf %34, %36 : vector<8x1xf32>
    %c0_13 = arith.constant 0 : index
    %c0_14 = arith.constant 0 : index
    %38 = vector.load %arg7[%c0_13, %c0_14] : memref<8x1xf32, #tpu.memory_space<vmem>>, vector<8x1xf32>
    tpu.vector_store %arg7[%c0_13, %c0_14], %37 {strides = array<i32>} : memref<8x1xf32, #tpu.memory_space<vmem>>, vector<8x1xf32>,
    %c0_15 = arith.constant 0 : index
    %c0_16 = arith.constant 0 : index
    %39 = vector.load %arg4[%c0_15, %c0_16] : memref<8x128xi8, #tpu.memory_space<vmem>>, vector<8x128xi8>
    %40 = arith.sitofp %39 : vector<8x128xi8> to vector<8x128xf32>
    %c0_17 = arith.constant 0 : index
    %c0_18 = arith.constant 0 : index
    %41 = vector.load %arg8[%c0_17, %c0_18] : memref<8x1xf32, #tpu.memory_space<vmem>>, vector<8x1xf32>
    %42 = arith.mulf %40, %7 : vector<8x128xf32>
    %cst_19 = arith.constant dense<0.000000e+00> : vector<8xf32>
    %43 = vector.multi_reduction <add>, %42, %cst_19 [1] : vector<8x128xf32> to vector<8xf32>
    %44 = vector.shape_cast %43 : vector<8xf32> to vector<8x1xf32>
    %45 = arith.addf %41, %44 : vector<8x1xf32>
    %c0_20 = arith.constant 0 : index
    %c0_21 = arith.constant 0 : index
    %46 = vector.load %arg8[%c0_20, %c0_21] : memref<8x1xf32, #tpu.memory_space<vmem>>, vector<8x1xf32>
    tpu.vector_store %arg8[%c0_20, %c0_21], %45 {strides = array<i32>} : memref<8x1xf32, #tpu.memory_space<vmem>>, vector<8x1xf32>,
    %c0_22 = arith.constant 0 : index
    %c0_23 = arith.constant 0 : index
    %47 = vector.load %arg9[%c0_22, %c0_23] : memref<8x1xf32, #tpu.memory_space<vmem>>, vector<8x1xf32>
    %cst_24 = arith.constant dense<0.000000e+00> : vector<8xf32>
    %48 = vector.multi_reduction <add>, %40, %cst_24 [1] : vector<8x128xf32> to vector<8xf32>
    %49 = vector.shape_cast %48 : vector<8xf32> to vector<8x1xf32>
    %50 = arith.addf %47, %49 : vector<8x1xf32>
    %c0_25 = arith.constant 0 : index
    %c0_26 = arith.constant 0 : index
    %51 = vector.load %arg9[%c0_25, %c0_26] : memref<8x1xf32, #tpu.memory_space<vmem>>, vector<8x1xf32>
    tpu.vector_store %arg9[%c0_25, %c0_26], %50 {strides = array<i32>} : memref<8x1xf32, #tpu.memory_space<vmem>>, vector<8x1xf32>,
    %c0_27 = arith.constant 0 : index
    %c0_28 = arith.constant 0 : index
    %52 = vector.load %arg6[%c0_27, %c0_28] : memref<8x1xf32, #tpu.memory_space<vmem>>, vector<8x1xf32>
    tpu.vector_store %arg6[%c0_27, %c0_28], %25 {strides = array<i32>} : memref<8x1xf32, #tpu.memory_space<vmem>>, vector<8x1xf32>,
    %c0_i32_29 = arith.constant 0 : i32
    %53 = arith.cmpi eq, %arg1, %c0_i32_29 : i32
    %54 = arith.extui %53 : i1 to i32
    %c0_i32_30 = arith.constant 0 : i32
    %55 = arith.cmpi ne, %54, %c0_i32_30 : i32
    scf.if %55 {
      %c0_31 = arith.constant 0 : index
      %c0_32 = arith.constant 0 : index
      %56 = vector.load %arg6[%c0_31, %c0_32] : memref<8x1xf32, #tpu.memory_space<vmem>>, vector<8x1xf32>
      %c0_33 = arith.constant 0 : index
      %c0_34 = arith.constant 0 : index
      %57 = vector.load %arg7[%c0_33, %c0_34] : memref<8x1xf32, #tpu.memory_space<vmem>>, vector<8x1xf32>
      %cst_35 = arith.constant 9.99999996E-13 : f32
      %58 = vector.broadcast %cst_35 : f32 to vector<8x1xf32>
      %59 = arith.addf %57, %58 : vector<8x1xf32>
      %60 = math.log %59 : vector<8x1xf32>
      %61 = arith.addf %56, %60 : vector<8x1xf32>
      %c0_36 = arith.constant 0 : index
      %c0_37 = arith.constant 0 : index
      %62 = vector.load %arg9[%c0_36, %c0_37] : memref<8x1xf32, #tpu.memory_space<vmem>>, vector<8x1xf32>
      %c0_38 = arith.constant 0 : index
      %c0_39 = arith.constant 0 : index
      %63 = vector.load %arg8[%c0_38, %c0_39] : memref<8x1xf32, #tpu.memory_space<vmem>>, vector<8x1xf32>
      %cst_40 = arith.constant 9.99999996E-13 : f32
      %64 = vector.broadcast %cst_40 : f32 to vector<8x1xf32>
      %65 = arith.maximumf %62, %64 : vector<8x1xf32>
      %66 = arith.divf %63, %65 : vector<8x1xf32>
      %67 = arith.subf %66, %61 : vector<8x1xf32>
      %68 = tpu.iota {dimensions = array<i32: 0>} : vector<8x1xi32>
      %c8_i32_41 = arith.constant 8 : i32
      %69 = arith.muli %arg0, %c8_i32_41 : i32
      %70 = vector.broadcast %69 : i32 to vector<8x1xi32>
      %71 = arith.addi %68, %70 : vector<8x1xi32>
      %c2_i32 = arith.constant 2 : i32
      %72 = vector.broadcast %c2_i32 : i32 to vector<8x1xi32>
      %73 = arith.cmpi slt, %71, %72 : vector<8x1xi32>
      %cst_42 = arith.constant 0.000000e+00 : f32
      %74 = vector.broadcast %cst_42 : f32 to vector<8x1xf32>
      %75 = arith.cmpf ogt, %62, %74 : vector<8x1xf32>
      %76 = arith.andi %73, %75 : vector<8x1xi1>
      %cst_43 = arith.constant 1.000000e+00 : f32
      %cst_44 = arith.constant 0.000000e+00 : f32
      %77 = vector.broadcast %cst_43 : f32 to vector<8x1xf32>
      %78 = vector.broadcast %cst_44 : f32 to vector<8x1xf32>
      %79 = arith.select %76, %77, %78 : vector<8x1xi1>, vector<8x1xf32>
      %cst_45 = arith.constant -1.000000e+00 : f32
      %80 = vector.broadcast %cst_45 : f32 to vector<8x1xf32>
      %81 = arith.mulf %80, %67 : vector<8x1xf32>
      %82 = arith.mulf %81, %79 : vector<8x1xf32>
      %83 = vector.shape_cast %82 : vector<8x1xf32> to vector<1x8x1xf32>
      %cst_46 = arith.constant dense<0.000000e+00> : vector<1xf32>
      %84 = vector.multi_reduction <add>, %83, %cst_46 [1, 2] : vector<1x8x1xf32> to vector<1xf32>
      %85 = vector.shape_cast %84 : vector<1xf32> to vector<1x1x1xf32>
      %86 = vector.extract %85[0, 0, 0] : f32 from vector<1x1x1xf32>
      %c0_47 = arith.constant 0 : index
      %c0_48 = arith.constant 0 : index
      %87 = memref.load %arg5[%c0_47, %c0_48] : memref<1x1xf32, #tpu.memory_space<smem>>
      memref.store %86, %arg5[%c0_47, %c0_48] : memref<1x1xf32, #tpu.memory_space<smem>>
    } else {
    }
    return
  }
  func.func @transform_0(%arg0: i32, %arg1: i32) -> (i32, i32) {
    %c0_i32 = arith.constant 0 : i32
    %c0_i32_0 = arith.constant 0 : i32
    return %arg0, %c0_i32 : i32, i32
  }
  func.func @transform_1(%arg0: i32, %arg1: i32) -> (i32, i32) {
    %c0_i32 = arith.constant 0 : i32
    %c0_i32_0 = arith.constant 0 : i32
    return %arg1, %c0_i32 : i32, i32
  }
  func.func @transform_2(%arg0: i32, %arg1: i32) -> (i32, i32) {
    %c0_i32 = arith.constant 0 : i32
    return %arg0, %arg1 : i32, i32
  }
  func.func @transform_3(%arg0: i32, %arg1: i32) -> (i32, i32) {
    %c0_i32 = arith.constant 0 : i32
    %c0_i32_0 = arith.constant 0 : i32
    return %arg0, %c0_i32 : i32, i32
  }
}

</mosaic_0001>

<bundles_post_ra>
// kernel: tpu_custom_call.1
= control target key start
LH: loop header
LB: loop body
LE: loop exit
PB: predicated region body
PF: predicated region fallthrough
CT: control target
= control target key end

     0   :  { %8 = vsyncpa [#allocation7], 0  ;;  %s445_s0 = inlined_call_operand.hbm [shape: bf16[8,128], index: 0, kind: input, shape index: {}]   ;;  %s446_s1 = inlined_call_operand.hbm [shape: bf16[128,128], index: 1, kind: input, shape index: {}]   ;;  %s447_s2 = inlined_call_operand.vmem [shape: s8[8,128], index: 2, kind: input, shape index: {}]   ;;  %s448_s3 = inlined_call_operand.hbm [shape: f32[1,1], index: 3, kind: output, shape index: {}]  }
   0x1   :  { %9 = vsyncpa [#allocation10], 0 }
   0x2   :  { %10 = vsyncpa [#allocation8], 0  ;;  %s378_s12 = smov [#allocation6]   ;;  %s379_s14 = smov [#allocation9]  }
   0x3   :  { %s17_s13 = sshll.u32 %s378_s12, 4  ;;  %s26_s15 = sshll.u32 %s379_s14, 4  ;;  %s18_s13 = int_to_ptr.vmem [resolvable:$true] %s17_s13  ;;  %s27_s15 = int_to_ptr.vmem [resolvable:$true] %s26_s15 }
   0x4   :  { %s332_s16 = scalar_lea.vmem %s18_s13, 64  ;;  %p337_p1 = scmp.lt.s32.totalorder %s18_s13, %s18_s13 }
   0x5   :  { %p333_p0 = scmp.ne.s32.totalorder %s18_s13, %s332_s16  ;;  %p338_p2 = scmp.lt.s32.totalorder %s332_s16, %s332_s16 }
   0x7   :  { %p339_p3 = por %p338_p2, %p337_p1 }
   0x9   :  { %p340_p4 = pnand %p339_p3, %p333_p0 }
   0xb   :  { %343 = shalt.err (!%p340_p4)
}
   0xc   :  { %20 = dma.hbm_to_vmem [thread:$0]  %s445_s0, 64, %s18_s13, [#allocation7]  }
   0xd   :  { %s352_s19 = scalar_lea.vmem %s27_s15, 1024  ;;  %p357_p6 = scmp.lt.s32.totalorder %s27_s15, %s27_s15 }
   0xe   :  { %p353_p5 = scmp.ne.s32.totalorder %s27_s15, %s352_s19  ;;  %p358_p7 = scmp.lt.s32.totalorder %s352_s19, %s352_s19 }
  0x10   :  { %p359_p8 = por %p358_p7, %p357_p6 }
  0x12   :  { %p360_p9 = pnand %p359_p8, %p353_p5 }
  0x14   :  { %363 = shalt.err (!%p360_p9)
}
  0x15   :  { %s380_s20 = smov 64   ;;  %s381_s21 = smov 4  }
  0x16   :  { %32 = dma.hbm_to_vmem [thread:$0]  %s446_s1, 1024, %s27_s15, [#allocation10], %s380_s20, %s380_s20, %s381_s21  }
  0x17   :  { %372 = dma.done.wait [#allocation7], 64  }
  0x18   :  { %373 = vsyncadd [#allocation7], 4294967232 }
  0x19   :  { %374 = dma.done.wait [#allocation10], 1024  }
  0x1a   :  { %375 = vsyncadd [#allocation10], 4294966272  ;;  %v382_v0 = vmov 0.0   ;;  %vm383_vm0 = vmmov 0   ;;  %v308_v1 = vld [vmem:[#allocation9 + $0x38] sm:$0xff]   ;;  %v309_v2 = vld [vmem:[#allocation9 + $0x30] sm:$0xff]   ;;  %v157_v11 = vlaneseq }
  0x1b   :  { %276 = vmatprep.subr.bf16.mxu0 %v382_v0  ;;  %292 = vmatprep.mubr.msk.bf16.mxu0 %vm383_vm0, %v382_v0  ;;  %v310_v3 = vld [vmem:[#allocation9 + $0x28] sm:$0xff]   ;;  %v311_v4 = vld [vmem:[#allocation9 + $0x20] sm:$0xff]   ;;  %v312_v5 = vld [vmem:[#allocation9 + $0x18] sm:$0xff]   ;;  %vm46_vm1 = vcmask 7168   ;;  %v384_v10 = vmov -inf   ;;  %v385_v20 = vmov 0  }
  0x1c   :  { %277 = vmatpush3.bf16.xpose.msra.mxu0 %v308_v1  ;;  %v313_v6 = vld [vmem:[#allocation9 + $0x10] sm:$0xff]   ;;  %v314_v7 = vld [vmem:[#allocation9 + $0x8] sm:$0xff]   ;;  %v315_v8 = vld [vmem:[#allocation9] sm:$0xff]   ;;  %47 = vst.msk [vmem:[#allocation2] sm:$0xff] %vm46_vm1, %v384_v10  ;;  %v429_v12 = vshrl.u32 %v157_v11, 7  ;;  %v163_v13 = vand.u32 127, %v157_v11  ;;  %307 = vset.pattern.permute.xlu0 %v385_v20 }
  0x1d   :  { %278 = vmatprep.subr.bf16.mxu0 %v382_v0  ;;  %v51_v9 = vld [vmem:[#allocation6] sm:$0xf]  ;;  %48 = vst.msk [vmem:[#allocation3] sm:$0xff] %vm46_vm1, %v382_v0  ;;  %49 = vst.msk [vmem:[#allocation4] sm:$0xff] %vm46_vm1, %v382_v0  ;;  %s386_s24 = smov [#allocation11]  }
  0x1e   :  { %50 = vst.msk [vmem:[#allocation5] sm:$0xff] %vm46_vm1, %v382_v0  ;;  %vm167_vm2 = vcmp.lt.s32.totalorder %v163_v13, 8  ;;  %vm168_vm3 = vcmp.ne.s32.totalorder %v163_v13, %v429_v12  ;;  %v196_v29 = vld [vmem:[%s447_s2] sm:$0x3]  ;;  %vm226_vm5 = vcmp.lt.s32.totalorder %v429_v12, 2 }
  0x1f   :  { %vm169_vm4 = vmand %vm167_vm2, %vm168_vm3  ;;  %v197_v32 = vunpack.c.0.s8 %v196_v29 }
  0x21   :  { %v198_v33 = vcvt.s32.f32 %v197_v32 }
  0x23   :  { %v171_v21 = vld [vmem:[#allocation2] sm:$0xff] }
  0x24   :  { %279 = vmatpush3.bf16.xpose.msra.mxu0 %v309_v2  ;;  %v186_v37 = vld [vmem:[#allocation3] sm:$0xff]  ;;  %v199_v44 = vld [vmem:[#allocation4] sm:$0xff] }
  0x25   :  { %280 = vmatprep.subr.bf16.mxu0 %v382_v0  ;;  %v205_v41 = vld [vmem:[#allocation5] sm:$0xff] }
  0x2c   :  { %281 = vmatpush3.bf16.xpose.msra.mxu0 %v310_v3 }
  0x2d   :  { %282 = vmatprep.subr.bf16.mxu0 %v382_v0 }
  0x34   :  { %283 = vmatpush3.bf16.xpose.msra.mxu0 %v311_v4 }
  0x35   :  { %284 = vmatprep.subr.bf16.mxu0 %v382_v0 }
  0x3c   :  { %285 = vmatpush3.bf16.xpose.msra.mxu0 %v312_v5 }
  0x3d   :  { %286 = vmatprep.subr.bf16.mxu0 %v382_v0 }
  0x44   :  { %287 = vmatpush3.bf16.xpose.msra.mxu0 %v313_v6 }
  0x45   :  { %288 = vmatprep.subr.bf16.mxu0 %v382_v0 }
  0x4c   :  { %289 = vmatpush3.bf16.xpose.msra.mxu0 %v314_v7 }
  0x4d   :  { %290 = vmatprep.subr.bf16.mxu0 %v382_v0 }
  0x54   :  { %291 = vmatpush3.bf16.xpose.msra.mxu0 %v315_v8 }
  0x5b   :  { %293 = vmatmul.mubr.bf16.vlgmr.msra.gmra.mxu0 %v51_v9 }
 0x11b   :  { %v150_v14 = vpop.f32.mrf.mxu0 }
 0x11c   :  { %v156_v15 = vmul.f32 14.285714, %v150_v14 }
 0x11d   :  { %v294_v16 = vpop.f32.mrf.mxu0 }
 0x11e   :  { %v170_v17 = vsel %vm169_vm4, %v156_v15, -inf  ;;  %v200_v34 = vmul.f32 %v198_v33, %v156_v15 }
 0x11f   :  { %172 = vmax.xlane.f32.xlu0 %v170_v17  ;;  %v153_v18 = vpop.f32.mrf.mxu0 }
 0x121   :  { %v295_v19 = vpop.f32.mrf.mxu0 }
 0x1a8   :  { %v173_v22 = vpop.xlane.xlu0 %172 }
 0x1a9   :  { %v174_v23 = vmax.f32 %v171_v21, %v173_v22 }
 0x1ab   :  { %v187_v24 = vsub.f32 %v171_v21, %v174_v23  ;;  %210 = vst.msk [vmem:[#allocation2] sm:$0xff] %vm46_vm1, %v174_v23  ;;  %177 = vperm.xlu0 %307, %v174_v23  }
 0x1ad   :  { %v188_v35 = vmul.f32 1.442695, %v187_v24 }
 0x1b2   :  { %v214_v54 = vld [vmem:[#allocation2] sm:$0xff] }
 0x226   :  { %v178_v25 = vpop.permute.xlu0 %177 }
 0x227   :  { %v180_v26 = vsub.f32 %v170_v17, %v178_v25 }
 0x229   :  { %v181_v27 = vpack.c.bf16 %v180_v26, %v180_v26 }
 0x22b   :  { %v183_v28 = vmul.bf16 1069105081, %v181_v27 }
 0x22d   :  { %316 = vpow.bf16 %v183_v28 }
 0x22e   :  { %318 = vpow2.f32 %v188_v35 }
 0x23b   :  { %v317_v30 = vpop.eup %316 }
 0x23c   :  { %v185_v31 = vunpack.c.l.bf16 %v317_v30  ;;  %v319_v36 = vpop.eup %318 }
 0x23d   :  { %v190_v38 = vmul.f32 %v319_v36, %v186_v37 }
 0x23e   :  { %191 = vadd.xlane.f32.xlu1 %v185_v31 }
 0x242   :  { %206 = vadd.xlane.f32.xlu1 %v198_v33 }
 0x246   :  { %201 = vadd.xlane.f32.xlu1 %v200_v34 }
 0x2c7   :  { %v192_v39 = vpop.xlane.xlu1 %191 }
 0x2c8   :  { %v193_v40 = vadd.f32 %v192_v39, %v190_v38 }
 0x2ca   :  { %195 = vst.msk [vmem:[#allocation3] sm:$0xff] %vm46_vm1, %v193_v40 }
 0x2cb   :  { %v207_v42 = vpop.xlane.xlu1 %206 }
 0x2cc   :  { %v208_v43 = vadd.f32 %v207_v42, %v205_v41 }
 0x2ce   :  { %209 = vst.msk [vmem:[#allocation5] sm:$0xff] %vm46_vm1, %v208_v43 }
 0x2cf   :  { %v202_v45 = vpop.xlane.xlu1 %201 }
 0x2d0   :  { %v203_v46 = vadd.f32 %v202_v45, %v199_v44 }
 0x2d1   :  { %v215_v47 = vld [vmem:[#allocation3] sm:$0xff] }
 0x2d2   :  { %204 = vst.msk [vmem:[#allocation4] sm:$0xff] %vm46_vm1, %v203_v46  ;;  %v216_v48 = vadd.f32 1e-12, %v215_v47 }
 0x2d4   :  { %320 = vlog2.f32 %v216_v48 }
 0x2d5   :  { %v220_v49 = vld [vmem:[#allocation5] sm:$0xff] }
 0x2d6   :  { %v222_v50 = vmax.f32 %v220_v49, 1e-12  ;;  %vm227_vm6 = vcmp.gt.f32.partialorder %v220_v49, 0.0 }
 0x2d7   :  { %vm228_vm7 = vmand %vm226_vm5, %vm227_vm6 }
 0x2d8   :  { %322 = vrcp.f32 %v222_v50  ;;  %v229_v60 = vsel %vm228_vm7, 1.0, %v382_v0 }
 0x2d9   :  { %v221_v55 = vld [vmem:[#allocation4] sm:$0xff] }
 0x2e1   :  { %v321_v51 = vpop.eup %320 }
 0x2e2   :  { %v218_v52 = vmul.f32 0.6931472, %v321_v51 }
 0x2e4   :  { %v219_v56 = vadd.f32 %v218_v52, %v214_v54 }
 0x2e5   :  { %v323_v53 = vpop.eup %322 }
 0x2e6   :  { %v224_v57 = vmul.f32 %v323_v53, %v221_v55 }
 0x2e8   :  { %v225_v58 = vsub.f32 %v224_v57, %v219_v56 }
 0x2ea   :  { %v230_v59 = vmul.f32 -1.0, %v225_v58 }
 0x2ec   :  { %v231_v61 = vmul.f32 %v230_v59, %v229_v60 }
 0x2ee   :  { %v232_v62 = vsel %vm46_vm1, %v231_v61, 0.0 }
 0x2ef   :  { %233 = vadd.xlane.f32.xlu1 %v232_v62 }
 0x378   :  { %v234_v63 = vpop.xlane.xlu1 %233 }
 0x379   :  { %v235_v1 = vrot.slane %v234_v63, 4 }
 0x37b   :  { %v236_v2 = vadd.f32 %v235_v1, %v234_v63 }
 0x37d   :  { %v237_v3 = vrot.slane %v236_v2, 2 }
 0x37f   :  { %v238_v4 = vadd.f32 %v237_v3, %v236_v2 }
 0x381   :  { %v239_v5 = vrot.slane %v238_v4, 1 }
 0x383   :  { %v240_v6 = vadd.f32 %v239_v5, %v238_v4 }
 0x385   :  { %296 = vpush %v240_v6 }
 0x3b6   :  { %s297_s2 = spop %296 }
 0x3b7   :  { %243 = sst [smem:[#allocation11]] %s297_s2 }
 0x3b8   :  { %251 = dma.smem_to_hbm %s386_s24, 16, %s448_s3, [#allocation8]  }
 0x3b9   :  { %376 = dma.done.wait [#allocation8], 16  }
 0x3ba   :  { %377 = vsyncadd [#allocation8], 4294967280 }
 0x3bb   :  { %255 = sfence }
 0x3bc   :  { %256 = vsyncpa [#allocation7], 1 }
 0x3bd   :  { %257 = vsyncpa [#allocation10], 1 }
 0x3be   :  { %258 = vsyncpa [#allocation8], 1 }

</bundles_post_ra>
